<compile_context>
chip_gen: v7x
topology: tpu7x:2x2x1
jax: 0.10.0
libtpu: 0.0.40
codegen_flags: <defaults>
</compile_context>

<pallas_src>
import functools

import jax
import jax.numpy as jnp
from jax.experimental import pallas as pl
from jax.experimental.pallas import tpu as pltpu

LANE = 128               # lane tile (last dim)
MAX_BLOCK_ROWS = 4096    # rows per grid step; multiple of 32 -> legal for any packed dtype
VMEM_LIMIT_BYTES = 32 * 1024 * 1024   # 2 inputs x 2 buffers x 2 MiB (f32) = 8 MiB used


def _dice_partial_kernel(x_ref, t_ref, out_ref, *, rows_total, block_rows, needs_mask):
    """One grid step: per-lane partial intersection and partial (sum_x + sum_t)."""
    x = x_ref[...].astype(jnp.float32)
    t = t_ref[...].astype(jnp.float32)

    if needs_mask:
        # Rows past `rows_total` in the clipped last block hold garbage VMEM; zero
        # them BEFORE the multiply/sum.  For non-last blocks valid >= block_rows so
        # the mask is all-true.  (Garbage, incl. NaN, sits in the unselected branch
        # of jnp.where, so the sums are exact.)
        row0 = pl.program_id(0) * block_rows
        valid = rows_total - row0
        row_ids = jax.lax.broadcasted_iota(jnp.int32, x.shape, 0)
        keep = row_ids < valid
        x = jnp.where(keep, x, 0.0)
        t = jnp.where(keep, t, 0.0)

    inter_lanes = jnp.sum(x * t, axis=0, keepdims=True)   # (1, LANE)
    den_lanes = jnp.sum(x + t, axis=0, keepdims=True)     # (1, LANE)
    # Single lane-dense output block (1, 2, LANE): row 0 = intersection partials,
    # row 1 = denominator partials.  One unmasked 128-wide output DMA per step.
    out_ref[0, 0:1, :] = inter_lanes
    out_ref[0, 1:2, :] = den_lanes


@jax.jit
def dice_loss(inputs, targets, smooth=1.0):
    """Pallas implementation of DiceLoss.forward. Returns a scalar f32."""
    x = inputs.reshape(-1)
    t = targets.reshape(-1)
    n = x.shape[0]

    rows = n // LANE
    n_main = rows * LANE

    # Lane tail (< 128 elements) handled in plain JAX — no full-array pad pass.
    if n_main < n:
        x_tail = x[n_main:].astype(jnp.float32)
        t_tail = t[n_main:].astype(jnp.float32)
        tail_inter = jnp.sum(x_tail * t_tail)
        tail_den = jnp.sum(x_tail) + jnp.sum(t_tail)
    else:
        tail_inter = jnp.float32(0.0)
        tail_den = jnp.float32(0.0)

    if rows > 0:
        x2 = x[:n_main].reshape(rows, LANE)
        t2 = t[:n_main].reshape(rows, LANE)

        if rows <= MAX_BLOCK_ROWS:
            block_rows = rows          # full-array-dim block: always legal, 1 step
        else:
            block_rows = MAX_BLOCK_ROWS
        num_blocks = (rows + block_rows - 1) // block_rows
        needs_mask = (num_blocks * block_rows) != rows

        kernel = functools.partial(
            _dice_partial_kernel,
            rows_total=rows,
            block_rows=block_rows,
            needs_mask=needs_mask,
        )

        partials = pl.pallas_call(
            kernel,
            out_shape=jax.ShapeDtypeStruct((num_blocks, 2, LANE), jnp.float32),
            grid_spec=pltpu.PrefetchScalarGridSpec(
                num_scalar_prefetch=0,
                grid=(num_blocks,),
                in_specs=[
                    pl.BlockSpec((block_rows, LANE), lambda i: (i, 0)),
                    pl.BlockSpec((block_rows, LANE), lambda i: (i, 0)),
                ],
                out_specs=pl.BlockSpec((1, 2, LANE), lambda i: (i, 0, 0)),
            ),
            compiler_params=pltpu.CompilerParams(
                # Independent per-block partials -> megacore split on v7x is free.
                dimension_semantics=("parallel",),
                vmem_limit_bytes=VMEM_LIMIT_BYTES,
            ),
        )(x2, t2)

        totals = jnp.sum(partials, axis=(0, 2))   # (2,)
        intersection = totals[0] + tail_inter
        denom = totals[1] + tail_den
    else:
        intersection = tail_inter
        denom = tail_den

    dice = (2.0 * intersection + smooth) / (denom + smooth)
    return 1.0 - dice


def dice_loss_ref(inputs, targets, smooth=1.0):
    x = inputs.reshape(-1).astype(jnp.float32)
    t = targets.reshape(-1).astype(jnp.float32)
    inter = jnp.sum(x * t)
    dice = (2.0 * inter + smooth) / (jnp.sum(x) + jnp.sum(t) + smooth)
    return 1.0 - dice


if __name__ == "__main__":
    key = jax.random.PRNGKey(0)
    k1, k2 = jax.random.split(key)

    # NCHW example: batch=2, channels=4, spatial=16x16 (128-aligned fast path,
    # single full-dim block).
    inputs = jax.nn.sigmoid(jax.random.normal(k1, (2, 4, 16, 16), jnp.float32))
    targets = (jax.random.uniform(k2, (2, 4, 16, 16)) > 0.5).astype(jnp.float32)
    loss = jax.block_until_ready(dice_loss(inputs, targets, 1.0))
    ref = dice_loss_ref(inputs, targets, 1.0)
    assert jnp.allclose(loss, ref, rtol=1e-5, atol=1e-5), (loss, ref)

    # Ragged flat length (n % 128 != 0): exercises the in-wrapper lane tail.
    k3, k4 = jax.random.split(k2)
    xi = jax.nn.sigmoid(jax.random.normal(k3, (3, 5, 7, 11), jnp.float32))
    ti = (jax.random.uniform(k4, (3, 5, 7, 11)) > 0.5).astype(jnp.float32)
    loss2 = jax.block_until_ready(dice_loss(xi, ti, 1.0))
    ref2 = dice_loss_ref(xi, ti, 1.0)
    assert jnp.allclose(loss2, ref2, rtol=1e-5, atol=1e-5), (loss2, ref2)

    # Large ragged shape: multi-block grid + clipped last block -> in-kernel row mask.
    k5, k6 = jax.random.split(k4)
    xl = jax.nn.sigmoid(jax.random.normal(k5, (2, 3, 300, 300), jnp.float32))
    tl = (jax.random.uniform(k6, (2, 3, 300, 300)) > 0.5).astype(jnp.float32)
    loss3 = jax.block_until_ready(dice_loss(xl, tl, 1.0))
    ref3 = dice_loss_ref(xl, tl, 1.0)
    assert jnp.allclose(loss3, ref3, rtol=1e-5, atol=1e-5), (loss3, ref3)

    print("KERNEL_OK")
</pallas_src>

<mosaic_0001>
module attributes {stable_mosaic.version = 11 : i64} {
  func.func @_dice_partial_kernel(%arg0: i32, %arg1: memref<16x128xf32, #tpu.memory_space<vmem>>, %arg2: memref<16x128xf32, #tpu.memory_space<vmem>>, %arg3: memref<1x2x128xf32, #tpu.memory_space<vmem>>) attributes {dimension_semantics = [#tpu.dimension_semantics<parallel>], iteration_bounds = array<i64: 1>, scalar_prefetch = 0 : i64, scratch_operands = 0 : i64, tpu.core_type = #tpu.core_type<tc>, window_params = [{transform_indices = @transform_0, window_bounds = array<i64: 16, 128>}, {transform_indices = @transform_1, window_bounds = array<i64: 16, 128>}, {transform_indices = @transform_2, window_bounds = array<i64: 1, 2, 128>}]} {
    %c0 = arith.constant 0 : index
    %c0_0 = arith.constant 0 : index
    %0 = vector.load %arg1[%c0, %c0_0] : memref<16x128xf32, #tpu.memory_space<vmem>>, vector<16x128xf32>
    %c0_1 = arith.constant 0 : index
    %c0_2 = arith.constant 0 : index
    %1 = vector.load %arg2[%c0_1, %c0_2] : memref<16x128xf32, #tpu.memory_space<vmem>>, vector<16x128xf32>
    %2 = arith.mulf %0, %1 : vector<16x128xf32>
    %cst = arith.constant dense<0.000000e+00> : vector<128xf32>
    %3 = vector.multi_reduction <add>, %2, %cst [0] : vector<16x128xf32> to vector<128xf32>
    %4 = vector.shape_cast %3 : vector<128xf32> to vector<1x128xf32>
    %5 = arith.addf %0, %1 : vector<16x128xf32>
    %cst_3 = arith.constant dense<0.000000e+00> : vector<128xf32>
    %6 = vector.multi_reduction <add>, %5, %cst_3 [0] : vector<16x128xf32> to vector<128xf32>
    %7 = vector.shape_cast %6 : vector<128xf32> to vector<1x128xf32>
    %c0_4 = arith.constant 0 : index
    %c0_5 = arith.constant 0 : index
    %c0_6 = arith.constant 0 : index
    %8 = vector.load %arg3[%c0_4, %c0_5, %c0_6] : memref<1x2x128xf32, #tpu.memory_space<vmem>>, vector<1x1x128xf32>
    %9 = vector.shape_cast %8 : vector<1x1x128xf32> to vector<1x128xf32>
    %10 = vector.shape_cast %4 : vector<1x128xf32> to vector<1x1x128xf32>
    tpu.vector_store %arg3[%c0_4, %c0_5, %c0_6], %10 {strides = array<i32>} : memref<1x2x128xf32, #tpu.memory_space<vmem>>, vector<1x1x128xf32>,
    %c0_7 = arith.constant 0 : index
    %c1 = arith.constant 1 : index
    %c0_8 = arith.constant 0 : index
    %11 = vector.load %arg3[%c0_7, %c1, %c0_8] : memref<1x2x128xf32, #tpu.memory_space<vmem>>, vector<1x1x128xf32>
    %12 = vector.shape_cast %11 : vector<1x1x128xf32> to vector<1x128xf32>
    %13 = vector.shape_cast %7 : vector<1x128xf32> to vector<1x1x128xf32>
    tpu.vector_store %arg3[%c0_7, %c1, %c0_8], %13 {strides = array<i32>} : memref<1x2x128xf32, #tpu.memory_space<vmem>>, vector<1x1x128xf32>,
    return
  }
  func.func @transform_0(%arg0: i32) -> (i32, i32) {
    %c0_i32 = arith.constant 0 : i32
    %c0_i32_0 = arith.constant 0 : i32
    return %arg0, %c0_i32 : i32, i32
  }
  func.func @transform_1(%arg0: i32) -> (i32, i32) {
    %c0_i32 = arith.constant 0 : i32
    %c0_i32_0 = arith.constant 0 : i32
    return %arg0, %c0_i32 : i32, i32
  }
  func.func @transform_2(%arg0: i32) -> (i32, i32, i32) {
    %c0_i32 = arith.constant 0 : i32
    %c0_i32_0 = arith.constant 0 : i32
    %c0_i32_1 = arith.constant 0 : i32
    return %arg0, %c0_i32, %c0_i32_0 : i32, i32, i32
  }
}

</mosaic_0001>

<bundles_post_ra>
// kernel: dice_loss.1
= control target key start
LH: loop header
LB: loop body
LE: loop exit
PB: predicated region body
PF: predicated region fallthrough
CT: control target
= control target key end

     0   :  { %s72_s0 = inlined_call_operand.vmem [shape: f32[16,128], index: 0, kind: input, shape index: {}]   ;;  %s73_s1 = inlined_call_operand.vmem [shape: f32[16,128], index: 1, kind: input, shape index: {}]   ;;  %s74_s2 = inlined_call_operand.vmem [shape: f32[1,2,128], index: 2, kind: output, shape index: {}]  }
   0x1   :  { %v11_v0 = vld [vmem:[%s72_s0] sm:$0xff]  ;;  %v12_v1 = vld [vmem:[%s72_s0 + $0x8] sm:$0xff] }
   0x2   :  { %v13_v2 = vld [vmem:[%s73_s1] sm:$0xff]  ;;  %v14_v3 = vld [vmem:[%s73_s1 + $0x8] sm:$0xff] }
   0x3   :  { %v15_v4 = vmul.f32 %v13_v2, %v11_v0  ;;  %v24_v5 = vadd.f32 %v13_v2, %v11_v0  ;;  %v16_v6 = vmul.f32 %v14_v3, %v12_v1  ;;  %v25_v7 = vadd.f32 %v14_v3, %v12_v1 }
   0x5   :  { %v17_v8 = vadd.f32 %v16_v6, %v15_v4  ;;  %v26_v9 = vadd.f32 %v25_v7, %v24_v5 }
   0x7   :  { %v18_v10 = vrot.slane %v17_v8, 4  ;;  %v27_v11 = vrot.slane %v26_v9, 4 }
   0x9   :  { %v19_v12 = vadd.f32 %v18_v10, %v17_v8  ;;  %v28_v13 = vadd.f32 %v27_v11, %v26_v9 }
   0xb   :  { %v20_v14 = vrot.slane %v19_v12, 2  ;;  %v29_v15 = vrot.slane %v28_v13, 2 }
   0xd   :  { %v21_v16 = vadd.f32 %v20_v14, %v19_v12  ;;  %v30_v17 = vadd.f32 %v29_v15, %v28_v13 }
   0xf   :  { %v22_v18 = vrot.slane %v21_v16, 1  ;;  %v31_v19 = vrot.slane %v30_v17, 1 }
  0x11   :  { %v23_v20 = vadd.f32 %v22_v18, %v21_v16  ;;  %v32_v21 = vadd.f32 %v31_v19, %v30_v17 }
  0x13   :  { %33 = vst [vmem:[%s74_s2] sm:$0x1] %v23_v20  ;;  %34 = vst [vmem:[%s74_s2 + $0x1] sm:$0x1] %v32_v21 }

</bundles_post_ra>
